<compile_context>
chip_gen: v7x
topology: tpu7x:2x2x1
jax: 0.10.0
libtpu: 0.0.40
codegen_flags: <defaults>
</compile_context>

<pallas_src>
import functools

import jax
import jax.numpy as jnp
import numpy as np
from jax import lax
from jax.experimental import pallas as pl
from jax.experimental.pallas import tpu as pltpu


# 3x3 taps: (dy, dx, flat kernel index ky*3+kx) with dy = ky-1, dx = kx-1.
_TAPS = tuple((ky - 1, kx - 1, ky * 3 + kx) for ky in range(3) for kx in range(3))


# --------------------------------------------------------------------------
# pltpu.roll rotate-direction self-calibration (one tiny kernel, cached).
# The result is folded into *static* shift amounts, so the conv stays correct
# regardless of the rotate-direction convention of the installed jax/Mosaic.
# --------------------------------------------------------------------------
def _probe_roll_kernel(x_ref, o_ref):
    t = pltpu.roll(x_ref[...], shift=1, axis=0)
    o_ref[...] = pltpu.roll(t, shift=1, axis=1)


@functools.lru_cache(maxsize=None)
def _roll_is_numpy_like():
    with jax.ensure_compile_time_eval():
        x = (jnp.arange(8, dtype=jnp.float32)[:, None] * 128.0
             + jnp.arange(128, dtype=jnp.float32)[None, :])
        y = pl.pallas_call(
            _probe_roll_kernel,
            out_shape=jax.ShapeDtypeStruct((8, 128), jnp.float32),
        )(x)
        v = int(np.asarray(jax.block_until_ready(y))[1, 1])
    r_src, c_src = divmod(v, 128)
    # numpy-like (out[j] = in[(j - shift) % n]) => out[1,1] came from in[0,0].
    return (r_src != 2, c_src != 2)      # (sublane axis, lane axis)


def _shift_amt(delta, n, numpy_like):
    """Static shift s such that roll(x, s, axis)[i] == x[(i + delta) % n]."""
    return (-delta) % n if numpy_like else delta % n


# --------------------------------------------------------------------------
# In-kernel helpers
# --------------------------------------------------------------------------
def _build_tap_masks(R, PW, H, W):
    """masks[(dy,dx)][r,c] = 1.0 iff pixel (r+dy, c+dx) is inside the SAME
    packed image; wrapped-in values from pltpu.roll are zeroed, reproducing
    the conv's zero padding.  Built once per grid step (hoisted)."""
    row = lax.broadcasted_iota(jnp.int32, (R, PW), 0) % H
    col = lax.broadcasted_iota(jnp.int32, (R, PW), 1) % W
    masks = {}
    for dy in (-1, 0, 1):
        for dx in (-1, 0, 1):
            if dy == 0 and dx == 0:
                continue
            conds = []
            if dy == 1:
                conds.append(row < H - 1)
            elif dy == -1:
                conds.append(row >= 1)
            if dx == 1:
                conds.append(col < W - 1)
            elif dx == -1:
                conds.append(col >= 1)
            m = conds[0]
            for c in conds[1:]:
                m = jnp.logical_and(m, c)
            masks[(dy, dx)] = m.astype(jnp.float32)
    return masks


def _tap(plane, dy, dx, masks, roll_np):
    """plane value at (r+dy, c+dx), zero-padded at per-image borders.
    Shifts run on the XLU (pltpu.roll); one mask multiply on the VPU."""
    sub_np, lane_np = roll_np
    R, PW = plane.shape
    t = plane
    if dy != 0:
        t = pltpu.roll(t, shift=_shift_amt(dy, R, sub_np), axis=0)   # sublane
    if dx != 0:
        t = pltpu.roll(t, shift=_shift_amt(dx, PW, lane_np), axis=1)  # lane
    m = masks.get((dy, dx))
    if m is not None:
        t = t * m
    return t


def _conv_1_to_c(x, w_ref, b_ref, dst, C, masks, roll_np):
    """1->C 3x3 conv + ReLU.  w_ref: SMEM (9*C,) HWIO flat, idx=(ky*3+kx)*C+co."""
    accs = [jnp.full(x.shape, b_ref[co], jnp.float32) for co in range(C)]
    for dy, dx, k in _TAPS:
        view = _tap(x, dy, dx, masks, roll_np)     # hoisted: built once, used C times
        for co in range(C):
            accs[co] = accs[co] + view * w_ref[k * C + co]
    for co in range(C):
        dst[co] = jnp.maximum(accs[co], 0.0)       # dense aligned (R, PW) store


def _conv_c_to_c(src, dst, w_ref, b_ref, C, masks, roll_np):
    """C->C 3x3 conv + ReLU.  w_ref: SMEM (9*C*C,), idx=((ky*3+kx)*C+ci)*C+co."""
    shape = src.shape[1:]
    accs = [jnp.full(shape, b_ref[co], jnp.float32) for co in range(C)]
    for ci in range(C):
        plane = src[ci]                            # one dense load per input channel
        for dy, dx, k in _TAPS:
            view = _tap(plane, dy, dx, masks, roll_np)
            base = (k * C + ci) * C
            for co in range(C):                    # scalar-weight FMA on the VPU
                accs[co] = accs[co] + view * w_ref[base + co]
    for co in range(C):
        dst[co] = jnp.maximum(accs[co], 0.0)


def _conv_c_to_1(src, w_ref, b_ref, C, masks, roll_np):
    """C->1 3x3 conv (no ReLU).  w_ref: SMEM (9*C,), idx=(ky*3+kx)*C+ci."""
    shape = src.shape[1:]
    acc = jnp.full(shape, b_ref[0], jnp.float32)
    for ci in range(C):
        plane = src[ci]
        for dy, dx, k in _TAPS:
            view = _tap(plane, dy, dx, masks, roll_np)
            acc = acc + view * w_ref[k * C + ci]
    return acc


def _deblocker_kernel(x_ref,
                      w1_ref, b1_ref, w2_ref, b2_ref,
                      w3_ref, b3_ref, w4_ref, b4_ref,
                      o_ref, buf_a, buf_b, *, C, H, W, roll_np):
    R, PW = x_ref.shape
    masks = _build_tap_masks(R, PW, H, W)

    _conv_1_to_c(x_ref[...], w1_ref, b1_ref, buf_a, C, masks, roll_np)
    _conv_c_to_c(buf_a, buf_b, w2_ref, b2_ref, C, masks, roll_np)
    _conv_c_to_c(buf_b, buf_a, w3_ref, b3_ref, C, masks, roll_np)
    res = _conv_c_to_1(buf_a, w4_ref, b4_ref, C, masks, roll_np)

    # Residual: re-read the input here (short live range) and write a fully
    # lane-dense, sublane-aligned (R, PW) block — unmasked vst.
    o_ref[...] = x_ref[...] + res


# --------------------------------------------------------------------------
# Host-side wrapper
# --------------------------------------------------------------------------
def _pick_group_tile(G, H, PW, C, *, budget_bytes=24 << 20, max_rows=64):
    """Pick how many packed groups each grid step handles.
      - VMEM footprint (2 feature buffers + auto-pipelined in/out double
        buffers) stays under `budget_bytes`,
      - per-step slab kept small (<= max_rows sublanes) so the C register
        accumulators do not spill,
      - prefer grid lengths that are a multiple of 2 so both v7x TensorCores
        get work (harmless on single-TC v5e/v6e)."""
    def vmem_ok(gt):
        R = gt * H
        return (2 * C + 2 * 2) * R * PW * 4 <= budget_bytes
    def shape_ok(gt):
        return (gt * H) % 8 == 0 or gt == G
    cands = [d for d in range(1, G + 1) if G % d == 0 and shape_ok(d) and vmem_ok(d)]
    if not cands:
        return 1 if shape_ok(1) else G
    small = [d for d in cands if d * H <= max_rows] or cands
    even = [d for d in small if (G // d) % 2 == 0]
    return max(even) if even else max(small)


def deblocker_forward(x_nchw, params, *, group_tile=None):
    """x_nchw: (N, 1, H, W) f32.  params: HWIO conv weights + biases."""
    N, cin, H, W = x_nchw.shape
    assert cin == 1, "DeBlocker takes a single-channel input"
    C = int(params["w2"].shape[-1])
    f32 = jnp.float32

    x = x_nchw.reshape(N, H, W).astype(f32)

    # ---- lane packing: put 128//W images side by side on the lane axis -----
    P = 1 if W >= 128 else max(1, 128 // W)
    Np = -(-N // P) * P
    if Np != N:                                    # pad batch with zero images
        x = jnp.concatenate([x, jnp.zeros((Np - N, H, W), f32)], axis=0)
    G, PW = Np // P, P * W
    # (G,P,H,W) -> (G,H,P,W) -> (G*H, P*W): wrapper-side layout plumbing that
    # makes the kernel's lane axis >= 128-dense (not compute hoisting).
    x2d = x.reshape(G, P, H, W).transpose(0, 2, 1, 3).reshape(G * H, PW)

    if group_tile is None:
        group_tile = _pick_group_tile(G, H, PW, C)
    assert G % group_tile == 0
    R = group_tile * H
    grid = (G // group_tile,)

    w1 = params["w1"].astype(f32).reshape(-1)      # (9*C,)   HWIO flattened
    b1 = params["b1"].astype(f32).reshape(-1)      # (C,)
    w2 = params["w2"].astype(f32).reshape(-1)      # (9*C*C,)
    b2 = params["b2"].astype(f32).reshape(-1)
    w3 = params["w3"].astype(f32).reshape(-1)
    b3 = params["b3"].astype(f32).reshape(-1)
    w4 = params["w4"].astype(f32).reshape(-1)      # (9*C,)
    b4 = params["b4"].astype(f32).reshape(-1)      # (1,)

    smem = pl.BlockSpec(memory_space=pltpu.MemorySpace.SMEM)

    # VMEM accounting: scratch + auto-pipelined in/out double buffers + mask /
    # accumulator headroom; set the scoped limit explicitly.
    scratch_bytes = 2 * C * R * PW * 4
    pipe_bytes = 2 * 2 * R * PW * 4
    work_bytes = 16 * R * PW * 4
    vmem_bytes = int(min(48 << 20,
                         max(16 << 20,
                             2 * (scratch_bytes + pipe_bytes + work_bytes))))

    kernel = functools.partial(_deblocker_kernel, C=C, H=H, W=W,
                               roll_np=_roll_is_numpy_like())

    out2d = pl.pallas_call(
        kernel,
        out_shape=jax.ShapeDtypeStruct((G * H, PW), f32),
        grid=grid,
        in_specs=[pl.BlockSpec((R, PW), lambda i: (i, 0)),
                  smem, smem, smem, smem, smem, smem, smem, smem],
        out_specs=pl.BlockSpec((R, PW), lambda i: (i, 0)),
        scratch_shapes=[pltpu.VMEM((C, R, PW), f32),   # feature ping
                        pltpu.VMEM((C, R, PW), f32)],  # feature pong
        compiler_params=pltpu.CompilerParams(
            dimension_semantics=("parallel",),
            vmem_limit_bytes=vmem_bytes),
    )(x2d, w1, b1, w2, b2, w3, b3, w4, b4)

    out = (out2d.reshape(G, H, P, W).transpose(0, 2, 1, 3)
           .reshape(Np, H, W)[:N])
    return out.reshape(N, 1, H, W)


# ---------------- pure-JAX reference (correctness check) -------------------
def _conv_ref(x_nhwc, w_hwio, b):
    y = lax.conv_general_dilated(
        x_nhwc, w_hwio, window_strides=(1, 1), padding="SAME",
        dimension_numbers=("NHWC", "HWIO", "NHWC"),
        precision=lax.Precision.HIGHEST)
    return y + b.reshape(1, 1, 1, -1)


def deblocker_ref(x_nchw, p):
    x = jnp.transpose(x_nchw, (0, 2, 3, 1)).astype(jnp.float32)
    r = jax.nn.relu(_conv_ref(x, p["w1"], p["b1"]))
    r = jax.nn.relu(_conv_ref(r, p["w2"], p["b2"]))
    r = jax.nn.relu(_conv_ref(r, p["w3"], p["b3"]))
    r = _conv_ref(r, p["w4"], p["b4"])
    return jnp.transpose(x + r, (0, 3, 1, 2))


if __name__ == "__main__":
    key = jax.random.PRNGKey(0)
    ks = jax.random.split(key, 9)
    C = 4                       # n_channel (small for the demo)
    N, H, W = 8, 32, 32         # 8 single-channel 32x32 blocks
                                # -> 4 images packed per 128-lane slab, 2 groups,
                                #    grid=(2,) "parallel" (both v7x TCs busy)

    params = {
        "w1": 0.2 * jax.random.normal(ks[0], (3, 3, 1, C), jnp.float32),
        "b1": 0.1 * jax.random.normal(ks[1], (C,), jnp.float32),
        "w2": 0.2 * jax.random.normal(ks[2], (3, 3, C, C), jnp.float32),
        "b2": 0.1 * jax.random.normal(ks[3], (C,), jnp.float32),
        "w3": 0.2 * jax.random.normal(ks[4], (3, 3, C, C), jnp.float32),
        "b3": 0.1 * jax.random.normal(ks[5], (C,), jnp.float32),
        "w4": 0.2 * jax.random.normal(ks[6], (3, 3, C, 1), jnp.float32),
        "b4": 0.1 * jax.random.normal(ks[7], (1,), jnp.float32),
    }
    x = jax.random.normal(ks[8], (N, 1, H, W), jnp.float32)   # NCHW, 1 channel

    out = jax.block_until_ready(deblocker_forward(x, params))
    ref = jax.block_until_ready(deblocker_ref(x, params))

    assert out.shape == x.shape
    np.testing.assert_allclose(np.asarray(out), np.asarray(ref),
                               atol=1e-4, rtol=1e-4)
    print("KERNEL_OK")
</pallas_src>

<mosaic_0001>
module attributes {stable_mosaic.version = 11 : i64} {
  func.func @_probe_roll_kernel(%arg0: memref<8x128xf32, #tpu.memory_space<vmem>>, %arg1: memref<8x128xf32, #tpu.memory_space<vmem>>) attributes {dimension_semantics = [], scalar_prefetch = 0 : i64, scratch_operands = 0 : i64, tpu.core_type = #tpu.core_type<tc>} {
    %c0 = arith.constant 0 : index
    %c0_0 = arith.constant 0 : index
    %0 = vector.load %arg0[%c0, %c0_0] : memref<8x128xf32, #tpu.memory_space<vmem>>, vector<8x128xf32>
    %c1_i32 = arith.constant 1 : i32
    %1 = tpu.dynamic_rotate %0 by %c1_i32 dim 0 : vector<8x128xf32>, i32 -> vector<8x128xf32>
    %c1_i32_1 = arith.constant 1 : i32
    %2 = tpu.dynamic_rotate %1 by %c1_i32_1 dim 1 : vector<8x128xf32>, i32 -> vector<8x128xf32>
    %c0_2 = arith.constant 0 : index
    %c0_3 = arith.constant 0 : index
    %3 = vector.load %arg1[%c0_2, %c0_3] : memref<8x128xf32, #tpu.memory_space<vmem>>, vector<8x128xf32>
    tpu.vector_store %arg1[%c0_2, %c0_3], %2 {strides = array<i32>} : memref<8x128xf32, #tpu.memory_space<vmem>>, vector<8x128xf32>,
    return
  }
}

</mosaic_0001>

<bundles_post_ra>
// kernel: tpu_custom_call.1
= control target key start
LH: loop header
LB: loop body
LE: loop exit
PB: predicated region body
PF: predicated region fallthrough
CT: control target
= control target key end

     0   :  { %6 = vsyncpa [#allocation3], 0  ;;  %s129_s0 = inlined_call_operand.hbm [shape: f32[8,128], index: 0, kind: input, shape index: {}]   ;;  %s130_s1 = inlined_call_operand.hbm [shape: f32[8,128], index: 1, kind: output, shape index: {}]  }
   0x1   :  { %7 = vsyncpa [#allocation4], 0  ;;  %s92_s6 = smov [#allocation2]   ;;  %s44_s10 = scalar_lea.hbm %s129_s0, 128 }
   0x2   :  { %s14_s7 = sshll.u32 %s92_s6, 4  ;;  %p45_p0 = scmp.ne.s32.totalorder %s129_s0, %s44_s10  ;;  %s15_s7 = int_to_ptr.vmem [resolvable:$true] %s14_s7 }
   0x3   :  { %p48_p1 = scmp.lt.u32.totalorder %s44_s10, %s129_s0 }
   0x5   :  { %p50_p2 = pnand %p48_p1, %p45_p0 }
   0x7   :  { %53 = shalt.err (!%p50_p2)
}
   0x8   :  { %s54_s15 = scalar_lea.vmem %s15_s7, 128  ;;  %p59_p4 = scmp.lt.s32.totalorder %s15_s7, %s15_s7 }
   0x9   :  { %p55_p3 = scmp.ne.s32.totalorder %s15_s7, %s54_s15  ;;  %p60_p5 = scmp.lt.s32.totalorder %s54_s15, %s54_s15 }
   0xb   :  { %p61_p6 = por %p60_p5, %p59_p4 }
   0xd   :  { %p62_p7 = pnand %p61_p6, %p55_p3 }
   0xf   :  { %65 = shalt.err (!%p62_p7)
}
  0x10   :  { %17 = dma.hbm_to_vmem [thread:$0]  %s129_s0, 128, %s15_s7, [#allocation3]  }
  0x11   :  { %88 = dma.done.wait [#allocation3], 128  }
  0x12   :  { %89 = vsyncadd [#allocation3], 4294967168  ;;  %v21_v0 = vld [vmem:[#allocation2] sm:$0xff]  ;;  %s93_s18 = smov 1   ;;  %s94_s19 = smov [#allocation5]  }
  0x13   :  { %v22_v1 = vrot.slane %v21_v0, 7  ;;  %s32_s20 = sshll.u32 %s94_s19, 4  ;;  %s33_s20 = int_to_ptr.vmem [resolvable:$true] %s32_s20 }
  0x14   :  { %s66_s21 = scalar_lea.vmem %s33_s20, 128  ;;  %p71_p9 = scmp.lt.s32.totalorder %s33_s20, %s33_s20 }
  0x15   :  { %23 = vrot.lane.b32.xlu0 %v22_v1, %s93_s18  ;;  %p67_p8 = scmp.ne.s32.totalorder %s33_s20, %s66_s21  ;;  %p72_p10 = scmp.lt.s32.totalorder %s66_s21, %s66_s21 }
  0x17   :  { %p73_p11 = por %p72_p10, %p71_p9 }
  0x19   :  { %p74_p12 = pnand %p73_p11, %p67_p8 }
  0x87   :  { %v24_v2 = vpop.permute.xlu0 %23 }
  0x88   :  { %25 = vst [vmem:[#allocation5] sm:$0xff] %v24_v2 }
  0x89   :  { %77 = shalt.err (!%p74_p12)
}
  0x8a   :  { %s78_s23 = scalar_lea.hbm %s130_s1, 128 }
  0x8b   :  { %p79_p13 = scmp.ne.s32.totalorder %s130_s1, %s78_s23  ;;  %p82_p0 = scmp.lt.u32.totalorder %s78_s23, %s130_s1 }
  0x8d   :  { %p84_p1 = pnand %p82_p0, %p79_p13 }
  0x8f   :  { %87 = shalt.err (!%p84_p1)
}
  0x90   :  { %35 = dma.vmem_to_hbm [thread:$0]  %s33_s20, 128, %s130_s1, [#allocation4]  }
  0x91   :  { %90 = dma.done.wait [#allocation4], 128  }
  0x92   :  { %91 = vsyncadd [#allocation4], 4294967168 }
  0x93   :  { %39 = vsyncpa [#allocation3], 1 }
  0x94   :  { %40 = vsyncpa [#allocation4], 1 }

</bundles_post_ra>
